<compile_context>
chip_gen: v7x
topology: tpu7x:2x2x1
jax: 0.10.0
libtpu: 0.0.40
codegen_flags: <defaults>
</compile_context>

<pallas_src>
import functools

import jax
import jax.numpy as jnp
from jax.experimental import pallas as pl
from jax.experimental.pallas import tpu as pltpu


def _round_up(x, m):
    return ((x + m - 1) // m) * m


# ----------------------------- Pallas kernel ------------------------------ #
def _fused_gat_kernel(amr_ref, edgeT_ref, src_row_ref, src_col_ref, dst_row_ref,
                      w_fc_ref, a_src_ref, a_dst_ref, v_edge_ref, out_ref,
                      *, lamda, n_pad, e_pad):
    l = pl.program_id(0)
    last = pl.num_programs(0) - 1

    # Layer 0: seed the resident output block with the input node features.
    @pl.when(l == 0)
    def _():
        out_ref[...] = amr_ref[...]

    node_h = out_ref[...]                                          # (N, Dp) f32

    # z = fc(node_h)   (Linear, no bias) -- main MXU matmul, f32 accumulate.
    z = jnp.dot(node_h, w_fc_ref[0], preferred_element_type=jnp.float32)

    # Per-node attention scalars on the VPU (no 1-wide MXU matmuls).
    s_src = jnp.sum(z * a_src_ref[0], axis=-1, keepdims=True)      # (N, 1)
    s_dst = jnp.sum(z * a_dst_ref[0], axis=-1, keepdims=True)      # (N, 1)

    # Per-edge edge-feature score, E kept on the lane axis:
    # t[e] = (a_edge @ W_edge) . edge_emb[e] + a_edge . b_edge
    # (bias folded via the ones row of edge_emb^T in the wrapper).
    t_row = jnp.sum(edgeT_ref[...] * v_edge_ref[0], axis=0,
                    keepdims=True)                                  # (1, E)

    # Graph structure masks built in-kernel from int32 indices (pad idx = -1).
    node_ids_sub = jax.lax.broadcasted_iota(jnp.int32, (n_pad, e_pad), 0)
    dst_mask = node_ids_sub == dst_row_ref[...]                     # (N, E) bool
    src_mask_T = node_ids_sub == src_row_ref[...]                   # (N, E) bool
    node_ids_lane = jax.lax.broadcasted_iota(jnp.int32, (e_pad, n_pad), 1)
    src_oh = (node_ids_lane == src_col_ref[...]).astype(jnp.bfloat16)  # (E, N)

    # Gather s_src to edges: masked broadcast + sublane reduce -> (1, E).
    e_src_row = jnp.sum(jnp.where(src_mask_T, s_src, 0.0), axis=0,
                        keepdims=True)

    # Raw per-edge score + leaky_relu (slope 0.01), laid out as (N, E).
    scores = s_dst + (e_src_row + t_row)                            # (N, E)
    scores = jnp.where(scores >= 0, scores, 0.01 * scores)

    # Per-destination masked softmax over incoming edges (lane-axis reductions).
    neg = jnp.float32(-1e30)
    logits = jnp.where(dst_mask, scores, neg)
    m = jnp.max(logits, axis=-1, keepdims=True)                     # (N, 1)
    p = jnp.exp(logits - m) * dst_mask.astype(jnp.float32)          # (N, E)
    denom = jnp.sum(p, axis=-1, keepdims=True)
    inv = pl.reciprocal(jnp.where(denom > 0, denom, 1.0), approx=True)
    alpha = p * inv                                                 # zero in-degree -> 0

    # Aggregation h[v] = sum_e alpha[v,e] * z[src[e]], reassociated when N<=D
    # so z_src is never materialized; bf16 MXU operands, f32 accumulation.
    d_pad = z.shape[-1]
    if n_pad <= d_pad:
        w_agg = jnp.dot(alpha.astype(jnp.bfloat16), src_oh,
                        preferred_element_type=jnp.float32)         # (N, N)
        h_agg = jnp.dot(w_agg.astype(jnp.bfloat16), z.astype(jnp.bfloat16),
                        preferred_element_type=jnp.float32)         # (N, Dp)
    else:
        z_src = jnp.dot(src_oh, z.astype(jnp.bfloat16),
                        preferred_element_type=jnp.float32)         # (E, Dp)
        h_agg = jnp.dot(alpha.astype(jnp.bfloat16), z_src.astype(jnp.bfloat16),
                        preferred_element_type=jnp.float32)

    out_ref[...] = (1.0 - lamda) * node_h + lamda * h_agg

    # MultiGAT inter-layer ReLU (all layers except the last).
    @pl.when(l != last)
    def _():
        out_ref[...] = jnp.maximum(out_ref[...], 0.0)


# ----------------------------- parameters --------------------------------- #
def init_params(key, bert_dim, edge_dim, edge_type_num, layers):
    keys = jax.random.split(key, 1 + 4 * layers)
    params = {
        "edge_embeds": jax.random.normal(keys[0], (edge_type_num, edge_dim),
                                         jnp.float32),
        "layers": [],
    }
    for i in range(layers):
        k1, k2, k3, k4 = keys[1 + 4 * i: 5 + 4 * i]
        params["layers"].append({
            "w_fc": 0.1 * jax.random.normal(k1, (bert_dim, bert_dim), jnp.float32),
            "w_edge": 0.1 * jax.random.normal(k2, (edge_dim, edge_dim), jnp.float32),
            "b_edge": 0.1 * jax.random.normal(k3, (edge_dim,), jnp.float32),
            "w_attn": 0.1 * jax.random.normal(
                k4, (1, 2 * bert_dim + edge_dim), jnp.float32),
        })
    return params


# ----------------------------- forward (glue + kernel) -------------------- #
def finalgnn_pallas_forward(params, src, dst, edge_type, amr_emb, lamda):
    N, D = amr_emb.shape
    E = int(src.shape[0])
    L = len(params["layers"])
    if E == 0:
        # PyTorch EdgeGAT returns node_h unchanged on empty graphs; MultiGAT
        # still applies the inter-layer ReLUs.
        out = amr_emb
        for _ in range(L - 1):
            out = jax.nn.relu(out)
        return out

    Ed = params["edge_embeds"].shape[1]
    f32 = jnp.float32
    Dp = _round_up(D, 128)
    Edp = _round_up(Ed + 1, 128)       # +1 ones-row folds the edge_fc bias
    Ep = _round_up(E, 128)
    Np = _round_up(N, 8)

    # Node features, zero padded (pad nodes have zero in-degree -> stay zero).
    amr_p = jnp.zeros((Np, Dp), f32).at[:N, :D].set(amr_emb.astype(f32))

    # Edge embeddings, transposed + augmented with a ones row (bias fold).
    edge_emb = params["edge_embeds"][edge_type].astype(f32)          # (E, Ed)
    edgeT = jnp.zeros((Edp, Ep), f32)
    edgeT = edgeT.at[:Ed, :E].set(edge_emb.T)
    edgeT = edgeT.at[Ed, :].set(1.0)

    # Graph indices; padded edges get -1 so they never match any node id.
    src_i = src.astype(jnp.int32)
    dst_i = dst.astype(jnp.int32)
    src_row = jnp.full((1, Ep), -1, jnp.int32).at[0, :E].set(src_i)
    dst_row = jnp.full((1, Ep), -1, jnp.int32).at[0, :E].set(dst_i)
    src_col = jnp.full((Ep, 1), -1, jnp.int32).at[:E, 0].set(src_i)

    # Per-layer parameters, padded & stacked; edge_fc composed with the edge
    # slice of attn_fc collapses to one vector (parameter-only precompute).
    w_fc_t = jnp.zeros((L, Dp, Dp), f32)
    a_src = jnp.zeros((L, 1, Dp), f32)
    a_dst = jnp.zeros((L, 1, Dp), f32)
    v_edge = jnp.zeros((L, Edp, 1), f32)
    for li, p in enumerate(params["layers"]):
        w_fc_t = w_fc_t.at[li, :D, :D].set(p["w_fc"].T.astype(f32))
        a_vec = p["w_attn"][0].astype(f32)                 # (2D + Ed,)
        a_src = a_src.at[li, 0, :D].set(a_vec[:D])
        a_dst = a_dst.at[li, 0, :D].set(a_vec[D:2 * D])
        a_e = a_vec[2 * D:]
        v_edge = v_edge.at[li, :Ed, 0].set(a_e @ p["w_edge"].astype(f32))
        v_edge = v_edge.at[li, Ed, 0].set(jnp.dot(a_e, p["b_edge"].astype(f32)))

    kernel = functools.partial(_fused_gat_kernel, lamda=float(lamda),
                               n_pad=Np, e_pad=Ep)

    operands = (amr_p, edgeT, src_row, src_col, dst_row,
                w_fc_t, a_src, a_dst, v_edge)
    flops = L * (2 * Np * Dp * Dp + 2 * Ep * Edp + 2 * Np * Ep * Np
                 + 2 * Np * Np * Dp + 8 * Np * Ep)
    cost = pl.CostEstimate(
        flops=int(flops),
        transcendentals=int(L * Np * (Ep + 1)),
        bytes_accessed=int(sum(int(a.size) * 4 for a in operands) + Np * Dp * 4))

    out_p = pl.pallas_call(
        kernel,
        out_shape=jax.ShapeDtypeStruct((Np, Dp), f32),
        grid=(L,),
        in_specs=[
            pl.BlockSpec((Np, Dp), lambda l: (0, 0)),       # amr_emb (layer 0 only)
            pl.BlockSpec((Edp, Ep), lambda l: (0, 0)),      # edge_emb^T (+ones row)
            pl.BlockSpec((1, Ep), lambda l: (0, 0)),        # src (lane row)
            pl.BlockSpec((Ep, 1), lambda l: (0, 0)),        # src (sublane col)
            pl.BlockSpec((1, Ep), lambda l: (0, 0)),        # dst (lane row)
            pl.BlockSpec((1, Dp, Dp), lambda l: (l, 0, 0)),  # W_fc^T, stacked
            pl.BlockSpec((1, 1, Dp), lambda l: (l, 0, 0)),   # a_src, stacked
            pl.BlockSpec((1, 1, Dp), lambda l: (l, 0, 0)),   # a_dst, stacked
            pl.BlockSpec((1, Edp, 1), lambda l: (l, 0, 0)),  # v_edge (+bias), stacked
        ],
        out_specs=pl.BlockSpec((Np, Dp), lambda l: (0, 0)),  # resident across layers
        compiler_params=pltpu.CompilerParams(
            dimension_semantics=("arbitrary",),
            # conservative scoped-VMEM request; safe on v7x's 64 MiB too
            vmem_limit_bytes=32 * 1024 * 1024),
        cost_estimate=cost,
    )(*operands)

    return out_p[:N, :D]


# ----------------------------- pure-JAX reference ------------------------- #
def finalgnn_reference(params, src, dst, edge_type, amr_emb, lamda):
    N, D = amr_emb.shape
    E = int(src.shape[0])
    nlayers = len(params["layers"])
    if E == 0:
        out = amr_emb
        for _ in range(nlayers - 1):
            out = jax.nn.relu(out)
        return out

    edge_emb = params["edge_embeds"][edge_type]
    h = amr_emb
    for i, p in enumerate(params["layers"]):
        z = h @ p["w_fc"].T
        ez = edge_emb @ p["w_edge"].T + p["b_edge"]
        z_src, z_dst = z[src], z[dst]
        a = jnp.concatenate([z_src, z_dst, ez], axis=1) @ p["w_attn"].T   # (E, 1)
        e = jax.nn.leaky_relu(a, 0.01)[:, 0]                              # (E,)
        m = jax.ops.segment_max(e, dst, num_segments=N)
        m = jnp.where(jnp.isfinite(m), m, 0.0)
        pe = jnp.exp(e - m[dst])
        denom = jax.ops.segment_sum(pe, dst, num_segments=N)
        alpha = pe / jnp.where(denom[dst] > 0, denom[dst], 1.0)
        h_msg = jax.ops.segment_sum(alpha[:, None] * z_src, dst, num_segments=N)
        out = (1.0 - lamda) * h + lamda * h_msg
        if i != nlayers - 1:
            out = jax.nn.relu(out)
        h = out
    return h


# ----------------------------------- main ---------------------------------- #
if __name__ == "__main__":
    bert_dim = 32
    edge_dim = 16
    edge_type_num = 8
    layers = 2
    lamda = 0.5
    N, E = 8, 16

    key = jax.random.PRNGKey(0)
    kp, kn, ks, kd, kt = jax.random.split(key, 5)

    params = init_params(kp, bert_dim, edge_dim, edge_type_num, layers)
    amr_emb = jax.random.normal(kn, (N, bert_dim), jnp.float32)
    src = jax.random.randint(ks, (E,), 0, N, dtype=jnp.int32)
    dst = jax.random.randint(kd, (E,), 0, N, dtype=jnp.int32)
    edge_type = jax.random.randint(kt, (E,), 0, edge_type_num, dtype=jnp.int32)

    out = finalgnn_pallas_forward(params, src, dst, edge_type, amr_emb, lamda)
    out = jax.block_until_ready(out)

    ref = finalgnn_reference(params, src, dst, edge_type, amr_emb, lamda)
    ref = jax.block_until_ready(ref)

    assert out.shape == (N, bert_dim)
    # bf16 aggregation matmuls + approx reciprocal -> slightly looser tolerance
    # than a pure-f32 comparison.
    max_diff = float(jnp.max(jnp.abs(out - ref)))
    assert jnp.allclose(out, ref, atol=5e-2, rtol=5e-2), (
        f"max abs diff {max_diff}")
    print("KERNEL_OK")
</pallas_src>

<mosaic_0001>
module attributes {stable_mosaic.version = 11 : i64} {
  func.func @_fused_gat_kernel(%arg0: i32, %arg1: memref<8x128xf32, #tpu.memory_space<vmem>>, %arg2: memref<128x128xf32, #tpu.memory_space<vmem>>, %arg3: memref<1x128xi32, #tpu.memory_space<vmem>>, %arg4: memref<128x1xi32, #tpu.memory_space<vmem>>, %arg5: memref<1x128xi32, #tpu.memory_space<vmem>>, %arg6: memref<1x128x128xf32, #tpu.memory_space<vmem>>, %arg7: memref<1x1x128xf32, #tpu.memory_space<vmem>>, %arg8: memref<1x1x128xf32, #tpu.memory_space<vmem>>, %arg9: memref<1x128x1xf32, #tpu.memory_space<vmem>>, %arg10: memref<8x128xf32, #tpu.memory_space<vmem>>) attributes {dimension_semantics = [#tpu.dimension_semantics<arbitrary>], iteration_bounds = array<i64: 2>, scalar_prefetch = 0 : i64, scratch_operands = 0 : i64, tpu.core_type = #tpu.core_type<tc>, window_params = [{pipeline_mode = #tpu.pipeline_mode<synchronous>, transform_indices = @transform_0, window_bounds = array<i64: 8, 128>}, {pipeline_mode = #tpu.pipeline_mode<synchronous>, transform_indices = @transform_1, window_bounds = array<i64: 128, 128>}, {pipeline_mode = #tpu.pipeline_mode<synchronous>, transform_indices = @transform_2, window_bounds = array<i64: 1, 128>}, {pipeline_mode = #tpu.pipeline_mode<synchronous>, transform_indices = @transform_3, window_bounds = array<i64: 128, 1>}, {pipeline_mode = #tpu.pipeline_mode<synchronous>, transform_indices = @transform_4, window_bounds = array<i64: 1, 128>}, {transform_indices = @transform_5, window_bounds = array<i64: 1, 128, 128>}, {transform_indices = @transform_6, window_bounds = array<i64: 1, 1, 128>}, {transform_indices = @transform_7, window_bounds = array<i64: 1, 1, 128>}, {transform_indices = @transform_8, window_bounds = array<i64: 1, 128, 1>}, {pipeline_mode = #tpu.pipeline_mode<synchronous>, transform_indices = @transform_9, window_bounds = array<i64: 8, 128>}]} {
    %c0_i32 = arith.constant 0 : i32
    %0 = arith.cmpi eq, %arg0, %c0_i32 : i32
    %1 = arith.extui %0 : i1 to i32
    %c0_i32_0 = arith.constant 0 : i32
    %2 = arith.cmpi ne, %1, %c0_i32_0 : i32
    scf.if %2 {
      %c0_41 = arith.constant 0 : index
      %c0_42 = arith.constant 0 : index
      %88 = vector.load %arg1[%c0_41, %c0_42] : memref<8x128xf32, #tpu.memory_space<vmem>>, vector<8x128xf32>
      %c0_43 = arith.constant 0 : index
      %c0_44 = arith.constant 0 : index
      %89 = vector.load %arg10[%c0_43, %c0_44] : memref<8x128xf32, #tpu.memory_space<vmem>>, vector<8x128xf32>
      tpu.vector_store %arg10[%c0_43, %c0_44], %88 {strides = array<i32>} : memref<8x128xf32, #tpu.memory_space<vmem>>, vector<8x128xf32>,
    } else {
    }
    %c0 = arith.constant 0 : index
    %c0_1 = arith.constant 0 : index
    %3 = vector.load %arg10[%c0, %c0_1] : memref<8x128xf32, #tpu.memory_space<vmem>>, vector<8x128xf32>
    %c0_2 = arith.constant 0 : index
    %c0_3 = arith.constant 0 : index
    %c0_4 = arith.constant 0 : index
    %4 = vector.load %arg6[%c0_2, %c0_3, %c0_4] : memref<1x128x128xf32, #tpu.memory_space<vmem>>, vector<1x128x128xf32>
    %5 = vector.shape_cast %4 : vector<1x128x128xf32> to vector<128x128xf32>
    %cst = arith.constant dense<0.000000e+00> : vector<8x128xf32>
    %6 = tpu.matmul %3, %5, %cst {dimension_numbers = #tpu.dot_dimension_numbers<[1], [0], [0], [1], [0, 0, 1, 1], [], []>} : vector<8x128xf32>, vector<128x128xf32>, vector<8x128xf32> -> vector<8x128xf32>
    %c0_5 = arith.constant 0 : index
    %c0_6 = arith.constant 0 : index
    %c0_7 = arith.constant 0 : index
    %7 = vector.load %arg7[%c0_5, %c0_6, %c0_7] : memref<1x1x128xf32, #tpu.memory_space<vmem>>, vector<1x1x128xf32>
    %8 = vector.shape_cast %7 : vector<1x1x128xf32> to vector<1x128xf32>
    %9 = vector.broadcast %8 : vector<1x128xf32> to vector<8x128xf32>
    %10 = arith.mulf %6, %9 : vector<8x128xf32>
    %cst_8 = arith.constant dense<0.000000e+00> : vector<8xf32>
    %11 = vector.multi_reduction <add>, %10, %cst_8 [1] : vector<8x128xf32> to vector<8xf32>
    %12 = vector.shape_cast %11 : vector<8xf32> to vector<8x1xf32>
    %c0_9 = arith.constant 0 : index
    %c0_10 = arith.constant 0 : index
    %c0_11 = arith.constant 0 : index
    %13 = vector.load %arg8[%c0_9, %c0_10, %c0_11] : memref<1x1x128xf32, #tpu.memory_space<vmem>>, vector<1x1x128xf32>
    %14 = vector.shape_cast %13 : vector<1x1x128xf32> to vector<1x128xf32>
    %15 = vector.broadcast %14 : vector<1x128xf32> to vector<8x128xf32>
    %16 = arith.mulf %6, %15 : vector<8x128xf32>
    %cst_12 = arith.constant dense<0.000000e+00> : vector<8xf32>
    %17 = vector.multi_reduction <add>, %16, %cst_12 [1] : vector<8x128xf32> to vector<8xf32>
    %18 = vector.shape_cast %17 : vector<8xf32> to vector<8x1xf32>
    %c0_13 = arith.constant 0 : index
    %c0_14 = arith.constant 0 : index
    %19 = vector.load %arg2[%c0_13, %c0_14] : memref<128x128xf32, #tpu.memory_space<vmem>>, vector<128x128xf32>
    %c0_15 = arith.constant 0 : index
    %c0_16 = arith.constant 0 : index
    %c0_17 = arith.constant 0 : index
    %20 = vector.load %arg9[%c0_15, %c0_16, %c0_17] : memref<1x128x1xf32, #tpu.memory_space<vmem>>, vector<1x128x1xf32>
    %21 = vector.shape_cast %20 : vector<1x128x1xf32> to vector<128x1xf32>
    %22 = vector.broadcast %21 : vector<128x1xf32> to vector<128x128xf32>
    %23 = arith.mulf %19, %22 : vector<128x128xf32>
    %cst_18 = arith.constant dense<0.000000e+00> : vector<128xf32>
    %24 = vector.multi_reduction <add>, %23, %cst_18 [0] : vector<128x128xf32> to vector<128xf32>
    %25 = vector.shape_cast %24 : vector<128xf32> to vector<1x128xf32>
    %26 = tpu.iota {dimensions = array<i32: 0>} : vector<8x128xi32>
    %c0_19 = arith.constant 0 : index
    %c0_20 = arith.constant 0 : index
    %27 = vector.load %arg5[%c0_19, %c0_20] : memref<1x128xi32, #tpu.memory_space<vmem>>, vector<1x128xi32>
    %28 = vector.broadcast %27 : vector<1x128xi32> to vector<8x128xi32>
    %29 = arith.cmpi eq, %26, %28 : vector<8x128xi32>
    %c0_21 = arith.constant 0 : index
    %c0_22 = arith.constant 0 : index
    %30 = vector.load %arg3[%c0_21, %c0_22] : memref<1x128xi32, #tpu.memory_space<vmem>>, vector<1x128xi32>
    %31 = vector.broadcast %30 : vector<1x128xi32> to vector<8x128xi32>
    %32 = arith.cmpi eq, %26, %31 : vector<8x128xi32>
    %33 = tpu.iota {dimensions = array<i32: 1>} : vector<128x8xi32>
    %c0_23 = arith.constant 0 : index
    %c0_24 = arith.constant 0 : index
    %34 = vector.load %arg4[%c0_23, %c0_24] : memref<128x1xi32, #tpu.memory_space<vmem>>, vector<128x1xi32>
    %35 = vector.broadcast %34 : vector<128x1xi32> to vector<128x8xi32>
    %36 = arith.cmpi eq, %33, %35 : vector<128x8xi32>
    %37 = arith.extui %36 : vector<128x8xi1> to vector<128x8xi32>
    %38 = arith.sitofp %37 : vector<128x8xi32> to vector<128x8xf32>
    %39 = arith.truncf %38 : vector<128x8xf32> to vector<128x8xbf16>
    %cst_25 = arith.constant 0.000000e+00 : f32
    %40 = vector.shape_cast %12 : vector<8x1xf32> to vector<8x1xf32>
    %41 = vector.broadcast %40 : vector<8x1xf32> to vector<8x128xf32>
    %42 = vector.broadcast %cst_25 : f32 to vector<8x128xf32>
    %43 = arith.select %32, %41, %42 : vector<8x128xi1>, vector<8x128xf32>
    %cst_26 = arith.constant dense<0.000000e+00> : vector<128xf32>
    %44 = vector.multi_reduction <add>, %43, %cst_26 [0] : vector<8x128xf32> to vector<128xf32>
    %45 = vector.shape_cast %44 : vector<128xf32> to vector<1x128xf32>
    %46 = arith.addf %45, %25 : vector<1x128xf32>
    %47 = vector.broadcast %18 : vector<8x1xf32> to vector<8x128xf32>
    %48 = vector.broadcast %46 : vector<1x128xf32> to vector<8x128xf32>
    %49 = arith.addf %47, %48 : vector<8x128xf32>
    %cst_27 = arith.constant 0.000000e+00 : f32
    %50 = vector.broadcast %cst_27 : f32 to vector<8x128xf32>
    %51 = arith.cmpf oge, %49, %50 : vector<8x128xf32>
    %cst_28 = arith.constant 0.00999999977 : f32
    %52 = vector.broadcast %cst_28 : f32 to vector<8x128xf32>
    %53 = arith.mulf %52, %49 : vector<8x128xf32>
    %54 = arith.select %51, %49, %53 : vector<8x128xi1>, vector<8x128xf32>
    %cst_29 = arith.constant -1.000000e+30 : f32
    %55 = vector.broadcast %cst_29 : f32 to vector<8x128xf32>
    %56 = arith.select %29, %54, %55 : vector<8x128xi1>, vector<8x128xf32>
    %cst_30 = arith.constant dense<0xFF800000> : vector<8xf32>
    %57 = vector.multi_reduction <maximumf>, %56, %cst_30 [1] : vector<8x128xf32> to vector<8xf32>
    %58 = vector.shape_cast %57 : vector<8xf32> to vector<8x1xf32>
    %59 = vector.broadcast %58 : vector<8x1xf32> to vector<8x128xf32>
    %60 = arith.subf %56, %59 : vector<8x128xf32>
    %61 = math.exp %60 : vector<8x128xf32>
    %62 = arith.extui %29 : vector<8x128xi1> to vector<8x128xi32>
    %63 = arith.sitofp %62 : vector<8x128xi32> to vector<8x128xf32>
    %64 = arith.mulf %61, %63 : vector<8x128xf32>
    %cst_31 = arith.constant dense<0.000000e+00> : vector<8xf32>
    %65 = vector.multi_reduction <add>, %64, %cst_31 [1] : vector<8x128xf32> to vector<8xf32>
    %66 = vector.shape_cast %65 : vector<8xf32> to vector<8x1xf32>
    %cst_32 = arith.constant 0.000000e+00 : f32
    %67 = vector.broadcast %cst_32 : f32 to vector<8x1xf32>
    %68 = arith.cmpf ogt, %66, %67 : vector<8x1xf32>
    %cst_33 = arith.constant 1.000000e+00 : f32
    %69 = vector.broadcast %cst_33 : f32 to vector<8x1xf32>
    %70 = arith.select %68, %66, %69 : vector<8x1xi1>, vector<8x1xf32>
    %71 = tpu.reciprocal %70 {approx = true} : vector<8x1xf32> -> vector<8x1xf32>
    %72 = vector.broadcast %71 : vector<8x1xf32> to vector<8x128xf32>
    %73 = arith.mulf %64, %72 : vector<8x128xf32>
    %74 = arith.truncf %73 : vector<8x128xf32> to vector<8x128xbf16>
    %cst_34 = arith.constant dense<0.000000e+00> : vector<8x8xf32>
    %75 = tpu.matmul %74, %39, %cst_34 {dimension_numbers = #tpu.dot_dimension_numbers<[1], [0], [0], [1], [0, 0, 1, 1], [], []>} : vector<8x128xbf16>, vector<128x8xbf16>, vector<8x8xf32> -> vector<8x8xf32>
    %76 = arith.truncf %75 : vector<8x8xf32> to vector<8x8xbf16>
    %77 = arith.truncf %6 : vector<8x128xf32> to vector<8x128xbf16>
    %cst_35 = arith.constant dense<0.000000e+00> : vector<8x128xf32>
    %78 = tpu.matmul %76, %77, %cst_35 {dimension_numbers = #tpu.dot_dimension_numbers<[1], [0], [0], [1], [0, 0, 1, 1], [], []>} : vector<8x8xbf16>, vector<8x128xbf16>, vector<8x128xf32> -> vector<8x128xf32>
    %cst_36 = arith.constant 5.000000e-01 : f32
    %79 = vector.broadcast %cst_36 : f32 to vector<8x128xf32>
    %80 = arith.mulf %79, %3 : vector<8x128xf32>
    %cst_37 = arith.constant 5.000000e-01 : f32
    %81 = vector.broadcast %cst_37 : f32 to vector<8x128xf32>
    %82 = arith.mulf %81, %78 : vector<8x128xf32>
    %83 = arith.addf %80, %82 : vector<8x128xf32>
    %c0_38 = arith.constant 0 : index
    %c0_39 = arith.constant 0 : index
    %84 = vector.load %arg10[%c0_38, %c0_39] : memref<8x128xf32, #tpu.memory_space<vmem>>, vector<8x128xf32>
    tpu.vector_store %arg10[%c0_38, %c0_39], %83 {strides = array<i32>} : memref<8x128xf32, #tpu.memory_space<vmem>>, vector<8x128xf32>,
    %c1_i32 = arith.constant 1 : i32
    %85 = arith.cmpi ne, %arg0, %c1_i32 : i32
    %86 = arith.extui %85 : i1 to i32
    %c0_i32_40 = arith.constant 0 : i32
    %87 = arith.cmpi ne, %86, %c0_i32_40 : i32
    scf.if %87 {
      %c0_41 = arith.constant 0 : index
      %c0_42 = arith.constant 0 : index
      %88 = vector.load %arg10[%c0_41, %c0_42] : memref<8x128xf32, #tpu.memory_space<vmem>>, vector<8x128xf32>
      %cst_43 = arith.constant 0.000000e+00 : f32
      %89 = vector.broadcast %cst_43 : f32 to vector<8x128xf32>
      %90 = arith.maximumf %88, %89 : vector<8x128xf32>
      %c0_44 = arith.constant 0 : index
      %c0_45 = arith.constant 0 : index
      %91 = vector.load %arg10[%c0_44, %c0_45] : memref<8x128xf32, #tpu.memory_space<vmem>>, vector<8x128xf32>
      tpu.vector_store %arg10[%c0_44, %c0_45], %90 {strides = array<i32>} : memref<8x128xf32, #tpu.memory_space<vmem>>, vector<8x128xf32>,
    } else {
    }
    return
  }
  func.func @transform_0(%arg0: i32) -> (i32, i32) {
    %c0_i32 = arith.constant 0 : i32
    %c0_i32_0 = arith.constant 0 : i32
    %c0_i32_1 = arith.constant 0 : i32
    return %c0_i32, %c0_i32_0 : i32, i32
  }
  func.func @transform_1(%arg0: i32) -> (i32, i32) {
    %c0_i32 = arith.constant 0 : i32
    %c0_i32_0 = arith.constant 0 : i32
    %c0_i32_1 = arith.constant 0 : i32
    return %c0_i32, %c0_i32_0 : i32, i32
  }
  func.func @transform_2(%arg0: i32) -> (i32, i32) {
    %c0_i32 = arith.constant 0 : i32
    %c0_i32_0 = arith.constant 0 : i32
    %c0_i32_1 = arith.constant 0 : i32
    return %c0_i32, %c0_i32_0 : i32, i32
  }
  func.func @transform_3(%arg0: i32) -> (i32, i32) {
    %c0_i32 = arith.constant 0 : i32
    %c0_i32_0 = arith.constant 0 : i32
    %c0_i32_1 = arith.constant 0 : i32
    return %c0_i32, %c0_i32_0 : i32, i32
  }
  func.func @transform_4(%arg0: i32) -> (i32, i32) {
    %c0_i32 = arith.constant 0 : i32
    %c0_i32_0 = arith.constant 0 : i32
    %c0_i32_1 = arith.constant 0 : i32
    return %c0_i32, %c0_i32_0 : i32, i32
  }
  func.func @transform_5(%arg0: i32) -> (i32, i32, i32) {
    %c0_i32 = arith.constant 0 : i32
    %c0_i32_0 = arith.constant 0 : i32
    %c0_i32_1 = arith.constant 0 : i32
    return %arg0, %c0_i32, %c0_i32_0 : i32, i32, i32
  }
  func.func @transform_6(%arg0: i32) -> (i32, i32, i32) {
    %c0_i32 = arith.constant 0 : i32
    %c0_i32_0 = arith.constant 0 : i32
    %c0_i32_1 = arith.constant 0 : i32
    return %arg0, %c0_i32, %c0_i32_0 : i32, i32, i32
  }
  func.func @transform_7(%arg0: i32) -> (i32, i32, i32) {
    %c0_i32 = arith.constant 0 : i32
    %c0_i32_0 = arith.constant 0 : i32
    %c0_i32_1 = arith.constant 0 : i32
    return %arg0, %c0_i32, %c0_i32_0 : i32, i32, i32
  }
  func.func @transform_8(%arg0: i32) -> (i32, i32, i32) {
    %c0_i32 = arith.constant 0 : i32
    %c0_i32_0 = arith.constant 0 : i32
    %c0_i32_1 = arith.constant 0 : i32
    return %arg0, %c0_i32, %c0_i32_0 : i32, i32, i32
  }
  func.func @transform_9(%arg0: i32) -> (i32, i32) {
    %c0_i32 = arith.constant 0 : i32
    %c0_i32_0 = arith.constant 0 : i32
    %c0_i32_1 = arith.constant 0 : i32
    return %c0_i32, %c0_i32_0 : i32, i32
  }
}

</mosaic_0001>

<bundles_post_ra>
// kernel: tpu_custom_call.1
= control target key start
LH: loop header
LB: loop body
LE: loop exit
PB: predicated region body
PF: predicated region fallthrough
CT: control target
= control target key end

     0   :  { %14 = vsyncpa [#allocation3], 0  ;;  %s1258_s30 = smov 0   ;;  %s1515_s0 = inlined_call_operand.vmem [shape: f32[8,128], index: 0, kind: input, shape index: {}]   ;;  %s1516_s1 = inlined_call_operand.vmem [shape: f32[128,128], index: 1, kind: input, shape index: {}]   ;;  %s1517_s2 = inlined_call_operand.vmem [shape: s32[1,128], index: 2, kind: input, shape index: {}]   ;;  %s1518_s3 = inlined_call_operand.vmem [shape: s32[128,1], index: 3, kind: input, shape index: {}]   ;;  %s1519_s4 = inlined_call_operand.vmem [shape: s32[1,128], index: 4, kind: input, shape index: {}]   ;;  %s1520_s5 = inlined_call_operand.vmem [shape: f32[2,128,128], index: 5, kind: input, shape index: {}]   ;;  %s1521_s6 = inlined_call_operand.vmem [shape: f32[2,1,128], index: 6, kind: input, shape index: {}]   ;;  %s1522_s7 = inlined_call_operand.vmem [shape: f32[2,1,128], index: 7, kind: input, shape index: {}]   ;;  %s1523_s8 = inlined_call_operand.vmem [shape: f32[2,128,1], index: 8, kind: input, shape index: {}]   ;;  %s1524_s9 = inlined_call_operand.hbm [shape: f32[8,128], index: 9, kind: output, shape index: {}]  }
   0x1 LB: > { %s1264_s10 = sadd.s32 4294967295, %s1200_s30   ;;  %p974_p0 = scmp.ge.s32.totalorder %s1200_s30, 1  ;;  %s1200_s30 = sphi %s1258_s30, %s20_s30  }
   0x2   : > { %p309_p1 = scmp.lt.s32.totalorder %s1200_s30, 3 }
   0x4   : > { %p310_p2 = pnand %p974_p0, %p309_p1 }
   0x5   : > { %p351_p3 = scmp.lt.s32.totalorder (!%p310_p2), %s1264_s10, 1  ;;  %p979_p4 = scmp.ne.s32.totalorder (!%p310_p2), %s1264_s10, 0 }
   0x6   : > { %313 = sbr.rel (%p310_p2) target bundleno = 1216 (0x4c0), region = 56 }
   0xd   : > { %s1270_s11 = scalar_select %p351_p3, %s1264_s10, 1 }
   0xe   : > { %371 = sbr.rel (%p979_p4) target bundleno = 21 (0x15), region = 60  ;;  %v372_v0 = vld [vmem:[%s1515_s0] sm:$0xff] (!%p979_p4) }
   0xf   : > { %s1023_s12 = sshll.u32 %s1270_s11, 7  ;;  %s358_s15 = scalar_lea.vmem %s1521_s6, %s1270_s11  ;;  %373 = vst [vmem:[#allocation2] sm:$0xff] (!%p979_p4), %v372_v0 }
  0x10   : > { %s1280_s18 = scalar_lea.vmem %s1520_s5, %s1023_s12  ;;  %s361_s21 = scalar_lea.vmem %s1522_s7, %s1270_s11 }
  0x11   : > { %s1289_s24 = scalar_lea.vmem %s1523_s8, %s1023_s12 }
  0x15 PF: > { %v375_v1 = vld [vmem:[%s1280_s18] sm:$0xff]  ;;  %v376_v2 = vld [vmem:[%s1280_s18 + $0x8] sm:$0xff]  ;;  %v377_v3 = vld [vmem:[%s1280_s18 + $0x10] sm:$0xff]  ;;  %v1202_v4 = vmov 0.0|0.0   ;;  %vm1203_vm0 = vmmov 0   ;;  %v1204_v7 = vmov 0.0  }
  0x16   : > { %1114 = vmatprep.subr.bf16.mxu0 %v1202_v4  ;;  %v1115_v5 = vpack.c.bf16 %v376_v2, %v375_v1  ;;  %v378_v6 = vld [vmem:[%s1280_s18 + $0x18] sm:$0xff]  ;;  %1085 = vmatprep.mubr.msk.f32.mxu0 %vm1203_vm0, %v1204_v7  ;;  %v1205_v8 = vmov 0   ;;  %v379_v10 = vld [vmem:[%s1280_s18 + $0x20] sm:$0xff]  ;;  %v380_v11 = vld [vmem:[%s1280_s18 + $0x28] sm:$0xff]  ;;  %vm840_vm1 = vcmask 1043456   ;;  %p1018_p5 = scmp.eq.s32.totalorder %s1264_s10, 1 }
  0x17   : > { %1158 = vset.pattern.permute.xlu0 %v1205_v8  ;;  %1159 = vset.pattern.permute.xlu1 %v1205_v8  ;;  %v1118_v9 = vpack.c.bf16 %v378_v6, %v377_v3  ;;  %v497_v12 = vld [vmem:[%s1289_s24] sm:$0xff]  ;;  %v499_v13 = vld [vmem:[%s1289_s24 + $0x10] sm:$0xff]  ;;  %v1121_v14 = vpack.c.bf16 %v380_v11, %v379_v10  ;;  %v498_v15 = vld [vmem:[%s1289_s24 + $0x8] sm:$0xff] }
  0x18   : > { %1116 = vmatpush3.bf16.msra.mxu0 %v1115_v5  ;;  %1088 = vmatprep.subr.bf16.mxu1 %v1204_v7  ;;  %v381_v16 = vld [vmem:[%s1280_s18 + $0x30] sm:$0xff]  ;;  %v382_v17 = vld [vmem:[%s1280_s18 + $0x38] sm:$0xff]  ;;  %v501_v20 = vld [vmem:[%s1289_s24 + $0x20] sm:$0xff] }
  0x19   : > { %1117 = vmatprep.subr.bf16.mxu0 %v1202_v4  ;;  %1104 = vmatprep.mubr.msk.bf16.mxu1 %vm1203_vm0, %v1204_v7  ;;  %v500_v18 = vld [vmem:[%s1289_s24 + $0x18] sm:$0xff]  ;;  %v1124_v19 = vpack.c.bf16 %v382_v17, %v381_v16  ;;  %v383_v21 = vld [vmem:[%s1280_s18 + $0x40] sm:$0xff]  ;;  %v384_v22 = vld [vmem:[%s1280_s18 + $0x48] sm:$0xff] }
  0x1a   : > { %515 = vperm.xlu0 %1158, %v497_v12   ;;  %525 = vperm.xlu1 %1159, %v499_v13   ;;  %v502_v23 = vld [vmem:[%s1289_s24 + $0x28] sm:$0xff]  ;;  %v1127_v24 = vpack.c.bf16 %v384_v22, %v383_v21  ;;  %v503_v25 = vld [vmem:[%s1289_s24 + $0x30] sm:$0xff]  ;;  %v386_v27 = vld [vmem:[%s1280_s18 + $0x58] sm:$0xff] }
  0x1b   : > { %v385_v26 = vld [vmem:[%s1280_s18 + $0x50] sm:$0xff]  ;;  %v504_v28 = vld [vmem:[%s1289_s24 + $0x38] sm:$0xff]  ;;  %v505_v30 = vld [vmem:[%s1289_s24 + $0x40] sm:$0xff] }
  0x1c   : > { %1119 = vmatpush3.bf16.msra.mxu0 %v1118_v9  ;;  %v1130_v29 = vpack.c.bf16 %v386_v27, %v385_v26  ;;  %v387_v31 = vld [vmem:[%s1280_s18 + $0x60] sm:$0xff]  ;;  %v388_v32 = vld [vmem:[%s1280_s18 + $0x68] sm:$0xff]  ;;  %v507_v35 = vld [vmem:[%s1289_s24 + $0x50] sm:$0xff] }
  0x1d   : > { %1120 = vmatprep.subr.bf16.mxu0 %v1202_v4  ;;  %v506_v33 = vld [vmem:[%s1289_s24 + $0x48] sm:$0xff]  ;;  %v1133_v34 = vpack.c.bf16 %v388_v32, %v387_v31  ;;  %v389_v36 = vld [vmem:[%s1280_s18 + $0x70] sm:$0xff]  ;;  %v390_v37 = vld [vmem:[%s1280_s18 + $0x78] sm:$0xff] }
  0x1e   : > { %520 = vperm.xlu0 %1158, %v498_v15   ;;  %530 = vperm.xlu1 %1159, %v500_v18   ;;  %v508_v38 = vld [vmem:[%s1289_s24 + $0x58] sm:$0xff]  ;;  %v1136_v39 = vpack.c.bf16 %v390_v37, %v389_v36  ;;  %v509_v40 = vld [vmem:[%s1289_s24 + $0x60] sm:$0xff]  ;;  %v510_v42 = vld [vmem:[%s1289_s24 + $0x68] sm:$0xff] }
  0x1f   : > { %v1337_v41 = vld [vmem:[#allocation2] sm:$0xff]  ;;  %v511_v43 = vld [vmem:[%s1289_s24 + $0x70] sm:$0xff]  ;;  %v512_v44 = vld [vmem:[%s1289_s24 + $0x78] sm:$0xff] }
  0x20   : > { %1122 = vmatpush3.bf16.msra.mxu0 %v1121_v14  ;;  %v981_v45 = vld [vmem:[%s361_s21] ss:$0 sm:$0xff]  ;;  %v647_v53 = vld [vmem:[%s1518_s3 + $0x8] sm:$0xff]  ;;  %v652_v55 = vld [vmem:[%s1518_s3 + $0x30] sm:$0xff] }
  0x21   : > { %1123 = vmatprep.subr.bf16.mxu0 %v1202_v4  ;;  %v980_v46 = vld [vmem:[%s358_s15] ss:$0 sm:$0xff]  ;;  %v651_v54 = vld [vmem:[%s1518_s3 + $0x28] sm:$0xff]  ;;  %v653_v56 = vld [vmem:[%s1518_s3 + $0x38] sm:$0xff] }
  0x22   : > { %535 = vperm.xlu0 %1158, %v501_v20   ;;  %540 = vperm.xlu1 %1159, %v502_v23   ;;  %v654_v57 = vld [vmem:[%s1518_s3 + $0x40] sm:$0xff]  ;;  %v655_v58 = vld [vmem:[%s1518_s3 + $0x48] sm:$0xff]  ;;  %v656_v59 = vld [vmem:[%s1518_s3 + $0x50] sm:$0xff] }
  0x23   : > { %v657_v60 = vld [vmem:[%s1518_s3 + $0x58] sm:$0xff]  ;;  %v658_v61 = vld [vmem:[%s1518_s3 + $0x60] sm:$0xff]  ;;  %v659_v62 = vld [vmem:[%s1518_s3 + $0x68] sm:$0xff] }
  0x24   : > { %1125 = vmatpush3.bf16.msra.mxu0 %v1124_v19  ;;  %v660_v63 = vld [vmem:[%s1518_s3 + $0x70] sm:$0xff]  ;;  %v481_v1 = vld [vmem:[%s1516_s1] sm:$0xff]  ;;  %v482_v2 = vld [vmem:[%s1516_s1 + $0x8] sm:$0xff] }
  0x25   : > { %1126 = vmatprep.subr.bf16.mxu0 %v1202_v4  ;;  %v483_v8 = vld [vmem:[%s1516_s1 + $0x10] sm:$0xff]  ;;  %v484_v12 = vld [vmem:[%s1516_s1 + $0x18] sm:$0xff]  ;;  %v485_v15 = vld [vmem:[%s1516_s1 + $0x20] sm:$0xff] }
  0x26   : > { %545 = vperm.xlu0 %1158, %v503_v25   ;;  %550 = vperm.xlu1 %1159, %v504_v28   ;;  %v486_v20 = vld [vmem:[%s1516_s1 + $0x28] sm:$0xff]  ;;  %v488_v28 = vld [vmem:[%s1516_s1 + $0x38] sm:$0xff]  ;;  %v489_v32 = vld [vmem:[%s1516_s1 + $0x40] sm:$0xff] }
  0x27   : > { %v490_v37 = vld [vmem:[%s1516_s1 + $0x48] sm:$0xff] }
  0x28   : > { %1128 = vmatpush3.bf16.msra.mxu0 %v1127_v24  ;;  %v487_v24 = vld [vmem:[%s1516_s1 + $0x30] sm:$0xff] }
  0x29   : > { %1129 = vmatprep.subr.bf16.mxu0 %v1202_v4 }
  0x2a   : > { %555 = vperm.xlu0 %1158, %v505_v30   ;;  %560 = vperm.xlu1 %1159, %v506_v33  }
  0x2c   : > { %1131 = vmatpush3.bf16.msra.mxu0 %v1130_v29 }
  0x2d   : > { %1132 = vmatprep.subr.bf16.mxu0 %v1202_v4 }
  0x2e   : > { %565 = vperm.xlu0 %1158, %v507_v35   ;;  %570 = vperm.xlu1 %1159, %v508_v38  }
  0x30   : > { %1134 = vmatpush3.bf16.msra.mxu0 %v1133_v34 }
  0x31   : > { %1135 = vmatprep.subr.bf16.mxu0 %v1202_v4 }
  0x32   : > { %575 = vperm.xlu0 %1158, %v509_v40   ;;  %v491_v40 = vld [vmem:[%s1516_s1 + $0x50] sm:$0xff] }
  0x34   : > { %1137 = vmatpush3.bf16.msra.mxu0 %v1136_v39 }
  0x35   : > { %1108 = vmatprep.subr.bf16.mxu0 %v1204_v7 }
  0x36   : > { %580 = vperm.xlu0 %1158, %v510_v42  }
  0x37   : > { %1086 = vmatmul.mubr.f32.vlgmr.msra.gmra.mrb[0].mxu0 %v1337_v41 }
  0x38   : > { %1110 = vmatprep.mubr.msk.bf16.mxu0 %vm1203_vm0, %v1204_v7 }
  0x3a   : > { %585 = vperm.xlu0 %1158, %v511_v43  }
  0x3e   : > { %590 = vperm.xlu0 %1158, %v512_v44  }
  0x99   : > { %v516_v0 = vpop.permute.xlu0 %515  ;;  %v526_v4 = vpop.permute.xlu1 %525 }
  0x9a   : > { %v593_v5 = vmul.f32 %v516_v0, %v481_v1  ;;  %v595_v10 = vmul.f32 %v526_v4, %v483_v8  ;;  %v630_v1 = vlaneseq  ;;  %v983_v4 = vld [vmem:[%s1517_s2] ss:$0 sm:$0xff] }
  0x9d   : > { %v521_v3 = vpop.permute.xlu0 %520  ;;  %v531_v11 = vpop.permute.xlu1 %530 }
  0x9e   : > { %v594_v6 = vmul.f32 %v521_v3, %v482_v2  ;;  %v596_v14 = vmul.f32 %v531_v11, %v484_v12  ;;  %v631_v3 = vshrl.u32 %v630_v1, 7 }
  0xa0   : > { %v609_v9 = vadd.f32 %v594_v6, %v593_v5  ;;  %vm643_vm2 = vcmp.eq.s32.totalorder %v631_v3, %v983_v4 }
  0xa1   : > { %v536_v16 = vpop.permute.xlu0 %535  ;;  %v541_v19 = vpop.permute.xlu1 %540 }
  0xa2   : > { %v610_v13 = vadd.f32 %v609_v9, %v595_v10  ;;  %v597_v17 = vmul.f32 %v536_v16, %v485_v15  ;;  %v598_v21 = vmul.f32 %v541_v19, %v486_v20 }
  0xa4   : > { %v611_v18 = vadd.f32 %v610_v13, %v596_v14 }
  0xa5   : > { %v546_v23 = vpop.permute.xlu0 %545  ;;  %v551_v27 = vpop.permute.xlu1 %550 }
  0xa6   : > { %v612_v22 = vadd.f32 %v611_v18, %v597_v17  ;;  %v599_v25 = vmul.f32 %v546_v23, %v487_v24  ;;  %v600_v30 = vmul.f32 %v551_v27, %v488_v28  ;;  %v648_v27 = vld [vmem:[%s1518_s3 + $0x10] sm:$0xff]  ;;  %v649_v28 = vld [vmem:[%s1518_s3 + $0x18] sm:$0xff] }
  0xa8   : > { %v613_v26 = vadd.f32 %v612_v22, %v598_v21  ;;  %v982_v21 = vld [vmem:[%s1519_s4] ss:$0 sm:$0xff] }
  0xa9   : > { %v556_v29 = vpop.permute.xlu0 %555  ;;  %v561_v36 = vpop.permute.xlu1 %560  ;;  %vm637_vm3 = vcmp.eq.s32.totalorder %v631_v3, %v982_v21 }
  0xaa   : > { %v614_v31 = vadd.f32 %v613_v26, %v599_v25  ;;  %v601_v33 = vmul.f32 %v556_v29, %v489_v32  ;;  %v602_v38 = vmul.f32 %v561_v36, %v490_v37  ;;  %v646_v26 = vld [vmem:[%s1518_s3] sm:$0xff]  ;;  %v1456_v36 = vand.u32 127, %v630_v1 }
  0xab   : > { %v650_v29 = vld [vmem:[%s1518_s3 + $0x20] sm:$0xff]  ;;  %v884_v1 = vmul.f32 0.5, %v1337_v41 }
  0xac   : > { %v615_v34 = vadd.f32 %v614_v31, %v600_v30 }
  0xad   : > { %v566_v35 = vpop.permute.xlu0 %565 }
  0xae   : > { %v616_v39 = vadd.f32 %v615_v34, %v601_v33  ;;  %v603_v43 = vmul.f32 %v566_v35, %v491_v40 }
  0xb0   : > { %v617_v44 = vadd.f32 %v616_v39, %v602_v38 }
  0xb1   : > { %v576_v42 = vpop.permute.xlu0 %575 }
 0x10a   : > { %v457_v47 = vpop.f32.mrb[0].mxu0 }
 0x10b   : > { %v835_v48 = vpack.c.bf16 %v457_v47, %v457_v47  ;;  %v1087_v49 = vpop.f32.mrb[1].mxu0  ;;  %v478_v50 = vmul.f32 %v981_v45, %v457_v47  ;;  %v468_v51 = vmul.f32 %v980_v46, %v457_v47  ;;  %v571_v45 = vpop.permute.xlu1 %570  ;;  %v492_v46 = vld [vmem:[%s1516_s1 + $0x58] sm:$0xff] }
 0x10c   : > { %v604_v47 = vmul.f32 %v571_v45, %v492_v46  ;;  %v493_v49 = vld [vmem:[%s1516_s1 + $0x60] sm:$0xff]  ;;  %v1000_v46 = vsel %vm637_vm3, 1.0, %v1204_v7 }
 0x10d   : > { %479 = vadd.xlane.f32.xlu0 %v478_v50  ;;  %469 = vadd.xlane.f32.xlu1 %v468_v51  ;;  %v842_v52 = vsel %vm840_vm1, %v835_v48, 0  ;;  %v618_v48 = vadd.f32 %v617_v44, %v603_v43  ;;  %v581_v50 = vpop.permute.xlu0 %580  ;;  %v605_v51 = vmul.f32 %v576_v42, %v493_v49  ;;  %v1206_v42 = vmov 1.0|1.0  }
 0x10e   : > { %1109 = vmatpush3.bf16.msra.mxu0 %v842_v52 }
 0x10f   : > { %v619_v52 = vadd.f32 %v618_v48, %v604_v47 }
 0x123   : > { %666 = vperm.xlu0 %1158, %v647_v53   ;;  %v494_v53 = vld [vmem:[%s1516_s1 + $0x68] sm:$0xff] }
 0x127   : > { %678 = vperm.xlu0 %1158, %v651_v54   ;;  %v586_v54 = vpop.permute.xlu0 %585 }
 0x12b   : > { %681 = vperm.xlu0 %1158, %v652_v55   ;;  %v606_v55 = vmul.f32 %v581_v50, %v494_v53  ;;  %v661_v53 = vld [vmem:[%s1518_s3 + $0x78] sm:$0xff] }
 0x12f   : > { %684 = vperm.xlu0 %1158, %v653_v56   ;;  %v620_v56 = vadd.f32 %v619_v52, %v605_v51 }
 0x133   : > { %687 = vperm.xlu0 %1158, %v654_v57   ;;  %v495_v57 = vld [vmem:[%s1516_s1 + $0x70] sm:$0xff] }
 0x137   : > { %690 = vperm.xlu0 %1158, %v655_v58   ;;  %v621_v58 = vadd.f32 %v620_v56, %v606_v55 }
 0x13b   : > { %693 = vperm.xlu0 %1158, %v656_v59   ;;  %v607_v59 = vmul.f32 %v586_v54, %v495_v57 }
 0x13f   : > { %696 = vperm.xlu0 %1158, %v657_v60   ;;  %v591_v60 = vpop.permute.xlu0 %590 }
 0x143   : > { %699 = vperm.xlu0 %1158, %v658_v61   ;;  %v496_v61 = vld [vmem:[%s1516_s1 + $0x78] sm:$0xff] }
 0x147   : > { %702 = vperm.xlu0 %1158, %v659_v62   ;;  %v622_v62 = vadd.f32 %v621_v58, %v607_v59 }
 0x14b   : > { %705 = vperm.xlu0 %1158, %v660_v63   ;;  %v608_v63 = vmul.f32 %v591_v60, %v496_v61 }
 0x14d   : > { %v623_v0 = vadd.f32 %v622_v62, %v608_v63 }
 0x14f   : > { %v624_v2 = vrot.slane %v623_v0, 4 }
 0x151   : > { %v625_v5 = vadd.f32 %v624_v2, %v623_v0 }
 0x153   : > { %v626_v6 = vrot.slane %v625_v5, 2 }
 0x155   : > { %v627_v11 = vadd.f32 %v626_v6, %v625_v5 }
 0x157   : > { %v628_v14 = vrot.slane %v627_v11, 1 }
 0x159   : > { %v629_v17 = vadd.f32 %v628_v14, %v627_v11 }
 0x19a   : > { %v470_v8 = vpop.xlane.xlu1 %469  ;;  %v480_v20 = vpop.xlane.xlu0 %479 }
 0x19b   : > { %v766_v9 = vsel %vm643_vm2, %v470_v8, 0.0 }
 0x19c   : > { %v767_v10 = vrot.slane %v766_v9, 4 }
 0x19e   : > { %v768_v12 = vadd.f32 %v767_v10, %v766_v9 }
 0x1a0   : > { %v769_v13 = vrot.slane %v768_v12, 2 }
 0x1a2   : > { %v770_v15 = vadd.f32 %v769_v13, %v768_v12  ;;  %v667_v30 = vpop.permute.xlu0 %666 }
 0x1a3   : > { %vm711_vm5 = vcmp.eq.s32.totalorder %v1456_v36, %v667_v30 }
 0x1a4   : > { %v771_v16 = vrot.slane %v770_v15, 1 }
 0x1a6   : > { %v772_v18 = vadd.f32 %v771_v16, %v770_v15  ;;  %v679_v31 = vpop.permute.xlu0 %678 }
 0x1a7   : > { %vm715_vm11 = vcmp.eq.s32.totalorder %v1456_v36, %v679_v31 }
 0x1a8   : > { %v773_v19 = vadd.f32 %v772_v18, %v629_v17 }
 0x1aa   : > { %v774_v22 = vadd.f32 %v773_v19, %v480_v20  ;;  %v682_v32 = vpop.permute.xlu0 %681 }
 0x1ab   : > { %vm716_vm15 = vcmp.eq.s32.totalorder %v1456_v36, %v682_v32 }
 0x1ac   : > { %vm775_vm4 = vcmp.ge.f32.partialorder %v774_v22, 0.0  ;;  %v776_v23 = vmul.f32 0.01, %v774_v22 }
 0x1ae   : > { %v777_v24 = vsel %vm775_vm4, %v774_v22, %v776_v23  ;;  %v685_v33 = vpop.permute.xlu0 %684 }
 0x1af   : > { %v778_v25 = vsel %vm637_vm3, %v777_v24, -1e+30  ;;  %vm717_vm14 = vcmp.eq.s32.totalorder %v1456_v36, %v685_v33 }
 0x1b0   : > { %779 = vmax.xlane.f32.xlu1 %v778_v25  ;;  %vm1007_vm0 = vmpackc.low %vm717_vm14, %vm716_vm15  ;;  %vm836_vm14 = vcmask 64512  }
 0x1b2   : > { %v688_v34 = vpop.permute.xlu0 %687 }
 0x1b3   : > { %vm718_vm2 = vcmp.eq.s32.totalorder %v1456_v36, %v688_v34 }
 0x1b6   : > { %v691_v39 = vpop.permute.xlu0 %690 }
 0x1b7   : > { %vm719_vm1 = vcmp.eq.s32.totalorder %v1456_v36, %v691_v39 }
 0x1b8   : > { %vm1009_vm3 = vmpackc.low %vm719_vm1, %vm718_vm2 }
 0x1ba   : > { %v694_v44 = vpop.permute.xlu0 %693 }
 0x1be   : > { %v697_v48 = vpop.permute.xlu0 %696 }
 0x1bf   : > { %vm721_vm4 = vcmp.eq.s32.totalorder %v1456_v36, %v697_v48 }
 0x1c1   : > { %663 = vperm.xlu1 %1159, %v646_v26  }
 0x1c2   : > { %v700_v51 = vpop.permute.xlu0 %699 }
 0x1c5   : > { %669 = vperm.xlu1 %1159, %v648_v27  }
 0x1c6   : > { %v703_v52 = vpop.permute.xlu0 %702 }
 0x1c9   : > { %672 = vperm.xlu1 %1159, %v649_v28  }
 0x1ca   : > { %v706_v55 = vpop.permute.xlu0 %705 }
 0x1cd   : > { %675 = vperm.xlu1 %1159, %v650_v29  }
 0x23d   : > { %v780_v35 = vpop.xlane.xlu1 %779 }
 0x23e   : > { %v781_v37 = vsub.f32 %v778_v25, %v780_v35 }
 0x240   : > { %v782_v38 = vmul.f32 1.442695, %v781_v37 }
 0x241   : > { %v664_v40 = vpop.permute.xlu1 %663 }
 0x242   : > { %1160 = vpow2.f32 %v782_v38  ;;  %vm710_vm6 = vcmp.eq.s32.totalorder %v1456_v36, %v664_v40 }
 0x243   : > { %vm1001_vm7 = vmpackc.low %vm711_vm5, %vm710_vm6  ;;  %vm720_vm5 = vcmp.eq.s32.totalorder %v1456_v36, %v694_v44 }
 0x244   : > { %1089 = vmatpush3.bf16.msk.msra.mxu1 %vm1001_vm7, %v1206_v42  ;;  %vm1011_vm6 = vmpackc.low %vm721_vm4, %vm720_vm5  ;;  %vm723_vm7 = vcmp.eq.s32.totalorder %v1456_v36, %v703_v52 }
 0x245   : > { %v670_v43 = vpop.permute.xlu1 %669  ;;  %1090 = vmatprep.subr.bf16.mxu1 %v1204_v7 }
 0x246   : > { %vm712_vm8 = vcmp.eq.s32.totalorder %v1456_v36, %v670_v43 }
 0x249   : > { %v673_v45 = vpop.permute.xlu1 %672 }
 0x24a   : > { %vm713_vm9 = vcmp.eq.s32.totalorder %v1456_v36, %v673_v45 }
 0x24b   : > { %vm1003_vm10 = vmpackc.low %vm713_vm9, %vm712_vm8  ;;  %vm722_vm8 = vcmp.eq.s32.totalorder %v1456_v36, %v700_v51 }
 0x24c   : > { %v1161_v47 = vpop.eup %1160  ;;  %1091 = vmatpush3.bf16.msk.msra.mxu1 %vm1003_vm10, %v1206_v42  ;;  %vm1013_vm9 = vmpackc.low %vm723_vm7, %vm722_vm8 }
 0x24d   : > { %v676_v49 = vpop.permute.xlu1 %675  ;;  %v786_v50 = vmul.f32 %v1161_v47, %v1000_v46  ;;  %1092 = vmatprep.subr.bf16.mxu1 %v1204_v7 }
 0x24e   : > { %vm714_vm12 = vcmp.eq.s32.totalorder %v1456_v36, %v676_v49 }
 0x24f   : > { %vm1005_vm13 = vmpackc.low %vm715_vm11, %vm714_vm12  ;;  %787 = vadd.xlane.f32.xlu1 %v786_v50  ;;  %vm724_vm11 = vcmp.eq.s32.totalorder %v1456_v36, %v706_v55 }
 0x250   : > { %1093 = vmatpush3.bf16.msk.msra.mxu1 %vm1005_vm13, %v1206_v42 }
 0x251   : > { %1094 = vmatprep.subr.bf16.mxu1 %v1204_v7 }
 0x254   : > { %1095 = vmatpush3.bf16.msk.msra.mxu1 %vm1007_vm0, %v1206_v42 }
 0x255   : > { %1096 = vmatprep.subr.bf16.mxu1 %v1204_v7 }
 0x258   : > { %1097 = vmatpush3.bf16.msk.msra.mxu1 %vm1009_vm3, %v1206_v42 }
 0x259   : > { %1098 = vmatprep.subr.bf16.mxu1 %v1204_v7 }
 0x25c   : > { %1099 = vmatpush3.bf16.msk.msra.mxu1 %vm1011_vm6, %v1206_v42 }
 0x25d   : > { %1100 = vmatprep.subr.bf16.mxu1 %v1204_v7 }
 0x260   : > { %708 = vperm.xlu1 %1159, %v661_v53   ;;  %1101 = vmatpush3.bf16.msk.msra.mxu1 %vm1013_vm9, %v1206_v42 }
 0x261   : > { %1102 = vmatprep.subr.bf16.mxu1 %v1204_v7 }
 0x2dc   : > { %v788_v54 = vpop.xlane.xlu1 %787 }
 0x2dd   : > { %vm789_vm10 = vcmp.gt.f32.partialorder %v788_v54, 0.0 }
 0x2de   : > { %v790_v56 = vsel %vm789_vm10, %v788_v54, 1.0 }
 0x2df   : > { %1162 = vrcp.f32 %v790_v56 }
 0x2e0   : > { %v709_v57 = vpop.permute.xlu1 %708 }
 0x2e1   : > { %vm725_vm12 = vcmp.eq.s32.totalorder %v1456_v36, %v709_v57 }
 0x2e2   : > { %vm1015_vm13 = vmpackc.low %vm725_vm12, %vm724_vm11 }
 0x2e3   : > { %1103 = vmatpush3.bf16.msk.msra.mxu1 %vm1015_vm13, %v1206_v42 }
 0x2e9   : > { %v1163_v58 = vpop.eup %1162 }
 0x2ea   : > { %v792_v59 = vmul.f32 %v1163_v58, %v786_v50 }
 0x2ec   : > { %v793_v60 = vpack.c.bf16 %v792_v59, %v792_v59 }
 0x2ee   : > { %1105 = vmatmul.mubr.bf16.vlgmr.msra.gmra.mrb[0].mxu1 %v793_v60 }
 0x3c1   : > { %v828_v61 = vpop.f32.mrb[0].mxu1 }
 0x3c2   : > { %v834_v62 = vpack.c.bf16 %v828_v61, %v828_v61  ;;  %v1106_v7 = vpop.f32.mrb[1].mxu1 }
 0x3c3   : > { %v831_v63 = vpop.f32.mrb[2].mxu1 }
 0x3c4   : > { %v1107_v0 = vpop.f32.mrb[3].mxu1  ;;  %1111 = vmatmul.mubr.msk.bf16.vlgmr.msra.gmra.mrb[4].mxu0 %vm836_vm14, %v834_v62 }
 0x496   : > { %891 = sbr.rel (%p1018_p5) target bundleno = 1191 (0x4a7), region = 64 }
 0x497   : > { %v878_v2 = vpop.f32.mrb[4].mxu0 }
 0x498   : > { %v885_v3 = vmul.f32 0.5, %v878_v2  ;;  %v1112_v4 = vpop.f32.mrb[5].mxu0 }
 0x499   : > { %v881_v5 = vpop.f32.mrb[6].mxu0 }
 0x49a   : > { %v886_v6 = vadd.f32 %v885_v3, %v884_v1  ;;  %v1113_v8 = vpop.f32.mrb[7].mxu0 }
 0x49c   : > { %887 = vst [vmem:[#allocation2] sm:$0xff] %v886_v6 }
 0x4a3   : > { %v892_v9 = vld [vmem:[#allocation2] sm:$0xff] }
 0x4a4   : > { %v893_v10 = vmax.f32 %v892_v9, 0.0 }
 0x4a6   : > { %894 = vst [vmem:[#allocation2] sm:$0xff] %v893_v10 }
 0x4a7 PF: > { %s1207_s23 = smov [#allocation2]  }
 0x4a8   : > { %s902_s24 = sshll.u32 %s1207_s23, 4  ;;  %s903_s24 = int_to_ptr.vmem [resolvable:$true] %s902_s24 }
 0x4a9   : > { %s1164_s25 = scalar_lea.vmem %s903_s24, 128  ;;  %p1171_p9 = scmp.lt.s32.totalorder %s903_s24, %s903_s24 }
 0x4aa   : > { %p1165_p6 = scmp.ne.s32.totalorder %s903_s24, %s1164_s25  ;;  %p1172_p10 = scmp.lt.s32.totalorder %s1164_s25, %s1164_s25 }
 0x4ac   : > { %p1166_p7 = pnand %p1165_p6, %p1018_p5  ;;  %p1173_p11 = por %p1172_p10, %p1171_p9 }
 0x4ae   : > { %p1167_p8 = pneg %p1166_p7 }
 0x4b0   : > { %p1174_p12 = pnand %p1173_p11, %p1167_p8 }
 0x4b2   : > { %1177 = shalt.err (!%p1174_p12)
}
 0x4b3   : > { %s1178_s28 = scalar_lea.hbm %s1524_s9, 128 }
 0x4b4   : > { %p1179_p13 = scmp.ne.s32.totalorder %s1524_s9, %s1178_s28  ;;  %p1184_p2 = scmp.lt.u32.totalorder %s1178_s28, %s1524_s9 }
 0x4b6   : > { %p1180_p0 = pnand %p1179_p13, %p1018_p5 }
 0x4b8   : > { %p1181_p1 = pneg %p1180_p0 }
 0x4ba   : > { %p1186_p3 = pnand %p1184_p2, %p1181_p1 }
 0x4bc   : > { %1189 = shalt.err (!%p1186_p3)
}
 0x4bd   : > { %1139 = dma.vmem_to_hbm [thread:$0]  (%p1018_p5), %s903_s24, 128, %s1524_s9, [#allocation3]  }
 0x4be   : > { %1195 = dma.done.wait (%p1018_p5), [#allocation3], 128  }
 0x4bf   : > { %1197 = vsyncadd (%p1018_p5), [#allocation3], 4294967168 }
 0x4c0 PF: > { %s20_s30 = sadd.s32 1, %s1200_s30  }
 0x4c1   : > { %p17_p4 = scmp.ge.s32.totalorder %s20_s30, 4  }
 0x4c3   :  { %19 = sbr.rel (!%p17_p4) target bundleno = 1 (0x1), region = 100 }
 0x4ca   :  { %915 = vsyncpa [#allocation3], 1 }
 0x4cb   :  { %917 = vsyncpa [#allocation3 + $0x1], 1 }

</bundles_post_ra>
